<compile_context>
chip_gen: v6e
topology: v6e:2x2x1
jax: 0.10.0
libtpu: 0.0.40
codegen_flags: <defaults>
</compile_context>

<pallas_src>
import functools

import jax
import jax.numpy as jnp
from jax.experimental import pallas as pl
from jax.experimental.pallas import tpu as pltpu

_LN_EPS = 1e-5  # PyTorch LayerNorm default eps


def _patch_merging_kernel(x_ref, we_ref, wo_ref, b_ref, o_ref, *, flatten):
    # x_ref : (TH, 2, W2, 2C) — TH row-pairs; dim 1 is the h-parity.
    #         parity 0 lanes = [x0 | x2], parity 1 lanes = [x1 | x3]
    # we_ref/wo_ref : (2C, Nout) — gamma-folded halves of reduction weight.T
    # b_ref : (1, Nout) f32 — beta @ weight.T
    # o_ref : (TH, W2, Nout)
    th, _, w2, k2 = x_ref.shape
    nout = o_ref.shape[-1]
    inv_n = 1.0 / float(2 * k2)     # LayerNorm is over 4C = 2 * k2 features
    cdt = we_ref.dtype              # MXU operand dtype (f32 or bf16)
    we = we_ref[...]
    wo = wo_ref[...]
    bias = b_ref[...]

    def ln_matmul(xe, xo):
        # xe/xo: (rows, 2C) f32 — the two parity halves of the 4C feature.
        mean = (jnp.sum(xe, axis=-1, keepdims=True)
                + jnp.sum(xo, axis=-1, keepdims=True)) * inv_n
        xe_c = xe - mean
        xo_c = xo - mean
        var = (jnp.sum(xe_c * xe_c, axis=-1, keepdims=True)
               + jnp.sum(xo_c * xo_c, axis=-1, keepdims=True)) * inv_n
        inv = jax.lax.rsqrt(var + _LN_EPS)
        y = jnp.dot((xe_c * inv).astype(cdt), we,
                    preferred_element_type=jnp.float32)
        y = y + jnp.dot((xo_c * inv).astype(cdt), wo,
                        preferred_element_type=jnp.float32)
        return y + bias

    if flatten:
        # W2 % 8 == 0 (or TH == 1): the (TH, W2, 2C)->(TH*W2, 2C) collapse is a
        # layout no-op, so do one big vectorized LN + matmul.
        rows = th * w2
        xe = x_ref[:, 0].astype(jnp.float32).reshape(rows, k2)
        xo = x_ref[:, 1].astype(jnp.float32).reshape(rows, k2)
        y = ln_matmul(xe, xo)
        o_ref[...] = y.reshape(th, w2, nout).astype(o_ref.dtype)
    else:
        # W2 % 8 != 0: avoid the sublane relayout a flatten would require; keep
        # the big per-step DMA and statically unroll per-row-pair 2-D matmuls
        # (mem-bound kernel, the extra MXU pushes hide behind the DMAs).
        for t in range(th):
            xe = x_ref[t, 0].astype(jnp.float32)   # (W2, 2C)
            xo = x_ref[t, 1].astype(jnp.float32)
            o_ref[t] = ln_matmul(xe, xo).astype(o_ref.dtype)


def _select_tiling(B, H2, W2, C, in_isz, out_isz, w_isz, block_rows):
    """Pick TH (row-pairs per block) and a vmem limit from the VMEM budget."""
    k2 = 2 * C
    nout = 2 * C
    try:
        vmem_cap = int(pltpu.get_tpu_info().vmem_capacity_bytes)
    except Exception:  # conservative default: v7x has 64 MiB per TensorCore
        vmem_cap = 64 * 1024 * 1024

    # Grid-invariant operands (single-buffered): two weight halves + bias row.
    const_bytes = 2 * k2 * nout * w_isz + nout * 4
    # Per row-pair: pipelined in/out slabs (x2 buffers) + f32 temporaries
    # (generous: ~5 f32 copies of the input slab + 2 of the output slab).
    in_row = 2 * W2 * k2 * in_isz
    out_row = W2 * nout * out_isz
    tmp_row = 5 * (2 * W2 * k2) * 4 + 2 * W2 * nout * 4
    per_row = 2 * in_row + 2 * out_row + tmp_row

    budget = min(int(vmem_cap * 0.6), 96 * 1024 * 1024)
    th = min(H2,
             max(1, block_rows // max(W2, 1)),
             max(1, (budget - const_bytes - (2 << 20)) // per_row))
    if W2 % 8 != 0:
        th = min(th, 64)   # bound the static unroll of the per-row-pair loop
    # Keep >= ~8 grid steps so DMA/compute overlap survives and v7x's 2 TCs
    # both get work from the "parallel" grid axes.
    th = min(th, max(1, -(-H2 // max(1, 8 // max(B, 1)))))
    th = max(1, th)

    est = const_bytes + th * per_row + (4 << 20)
    vmem_limit = int(min(max(est, 32 << 20), max(vmem_cap - (8 << 20), 32 << 20)))
    return th, vmem_limit


@functools.partial(jax.jit,
                   static_argnames=("input_resolution", "block_rows", "use_bf16"))
def patch_merging_forward(x, gamma, beta, weight, *, input_resolution,
                          block_rows=512, use_bf16=None):
    """x: (B, H*W, C); gamma/beta: (4C,); weight: (2C, 4C) (torch Linear layout)."""
    H, W = input_resolution
    B, L, C = x.shape
    assert L == H * W, "input feature has wrong size"
    assert H % 2 == 0 and W % 2 == 0, f"x size ({H}*{W}) are not even."
    H2, W2 = H // 2, W // 2
    k2 = 2 * C
    nout = 2 * C

    # bf16 MXU operands only when the activations are already bf16 (semantics-
    # preserving default); callers on v6e/v7x can pass use_bf16=True for f32
    # activations to halve the weight DMA / VMEM footprint.
    if use_bf16 is None:
        use_bf16 = (x.dtype == jnp.bfloat16)
    mxu_dtype = jnp.bfloat16 if use_bf16 else jnp.float32

    # Fold LN gamma into the reduction weight and precompute the bias term:
    #   out = normalize(x) @ (gamma[:,None] * W.T) + beta @ W.T
    wT = weight.astype(jnp.float32).T                              # (4C, Nout)
    wg = wT * gamma.astype(jnp.float32)[:, None]
    # torch concat order is [x0, x1, x2, x3]; the parity-0 stripe lanes carry
    # [x0 | x2] and the parity-1 stripe lanes carry [x1 | x3].
    w_even = jnp.concatenate([wg[0:C], wg[2 * C:3 * C]], axis=0).astype(mxu_dtype)
    w_odd = jnp.concatenate([wg[C:2 * C], wg[3 * C:4 * C]], axis=0).astype(mxu_dtype)
    bias = beta.astype(jnp.float32)[None, :] @ wT                  # (1, Nout)

    # Free view reshape: (B, H*W, C) -> (B, H/2, 2, W/2, 2C). No HBM copy.
    xv = x.reshape(B, H2, 2, W2, k2)

    in_isz = x.dtype.itemsize
    w_isz = jnp.dtype(mxu_dtype).itemsize
    th, vmem_limit = _select_tiling(B, H2, W2, C, in_isz, in_isz, w_isz,
                                    block_rows)
    flatten = (W2 % 8 == 0) or (th == 1)

    grid = (B, pl.cdiv(H2, th))

    def const_spec(shape):
        # Grid-invariant operand: constant index map + single VMEM buffer.
        return pl.BlockSpec(shape, lambda b, i: (0, 0),
                            pipeline_mode=pl.Buffered(1))

    out = pl.pallas_call(
        functools.partial(_patch_merging_kernel, flatten=flatten),
        out_shape=jax.ShapeDtypeStruct((B, H2, W2, nout), x.dtype),
        grid_spec=pltpu.PrefetchScalarGridSpec(
            num_scalar_prefetch=0,
            grid=grid,
            in_specs=[
                # One contiguous (TH, 2, W2, 2C) slab per step (both parities).
                pl.BlockSpec((None, th, 2, W2, k2),
                             lambda b, i: (b, i, 0, 0, 0)),
                const_spec((k2, nout)),     # gamma-folded weight, even stripe
                const_spec((k2, nout)),     # gamma-folded weight, odd stripe
                const_spec((1, nout)),      # beta @ W.T
            ],
            out_specs=pl.BlockSpec((None, th, W2, nout),
                                   lambda b, i: (b, i, 0, 0)),
        ),
        compiler_params=pltpu.CompilerParams(
            dimension_semantics=("parallel", "parallel"),
            vmem_limit_bytes=vmem_limit,
        ),
    )(xv, w_even, w_odd, bias)

    # TODO(synk): v5e-only follow-up — if a profile shows vst.msk saturation
    # (Nout not a multiple of 128), consider a lane-dense output presentation.
    return out.reshape(B, H2 * W2, nout)


def _reference_forward(x, gamma, beta, weight, input_resolution):
    """Pure-JAX f32 reference matching the torch PatchMerging module."""
    H, W = input_resolution
    B, L, C = x.shape
    xv = x.astype(jnp.float32).reshape(B, H, W, C)
    x0 = xv[:, 0::2, 0::2, :]
    x1 = xv[:, 1::2, 0::2, :]
    x2 = xv[:, 0::2, 1::2, :]
    x3 = xv[:, 1::2, 1::2, :]
    xm = jnp.concatenate([x0, x1, x2, x3], axis=-1).reshape(B, -1, 4 * C)
    mean = jnp.mean(xm, axis=-1, keepdims=True)
    var = jnp.mean((xm - mean) ** 2, axis=-1, keepdims=True)
    xn = ((xm - mean) / jnp.sqrt(var + _LN_EPS) * gamma.astype(jnp.float32)
          + beta.astype(jnp.float32))
    return xn @ weight.astype(jnp.float32).T


if __name__ == "__main__":
    key = jax.random.PRNGKey(0)

    def make_case(k, B, C, H, W, dtype):
        kx, kw, kg, kb = jax.random.split(k, 4)
        x = jax.random.normal(kx, (B, H * W, C), dtype=jnp.float32).astype(dtype)
        weight = jax.random.normal(kw, (2 * C, 4 * C), dtype=jnp.float32) * 0.02
        gamma = (jnp.ones((4 * C,), jnp.float32)
                 + 0.01 * jax.random.normal(kg, (4 * C,), dtype=jnp.float32))
        beta = 0.01 * jax.random.normal(kb, (4 * C,), dtype=jnp.float32)
        return x, gamma, beta, weight

    # Case 1: small shape, W2 % 8 == 0 (vectorized/flatten path), f32.
    B, C, H, W = 2, 4, 16, 16
    x, gamma, beta, weight = make_case(key, B, C, H, W, jnp.float32)
    out = jax.block_until_ready(
        patch_merging_forward(x, gamma, beta, weight, input_resolution=(H, W)))
    ref = _reference_forward(x, gamma, beta, weight, (H, W))
    assert out.shape == (B, (H // 2) * (W // 2), 2 * C), out.shape
    assert jnp.allclose(out, ref, atol=1e-4, rtol=1e-4), \
        float(jnp.max(jnp.abs(out - ref)))

    # Case 2: Swin-like resolution with W2 % 8 != 0 (unrolled matmul path), f32.
    Bb, Cb, Hb, Wb = 2, 8, 28, 28
    kb = jax.random.fold_in(key, 1)
    xb, gb, bb, wb = make_case(kb, Bb, Cb, Hb, Wb, jnp.float32)
    outb = jax.block_until_ready(
        patch_merging_forward(xb, gb, bb, wb, input_resolution=(Hb, Wb)))
    refb = _reference_forward(xb, gb, bb, wb, (Hb, Wb))
    assert outb.shape == (Bb, (Hb // 2) * (Wb // 2), 2 * Cb), outb.shape
    assert jnp.allclose(outb, refb, atol=1e-4, rtol=1e-4), \
        float(jnp.max(jnp.abs(outb - refb)))

    # Case 3: bf16 activations (bf16 MXU operands, f32 LN stats / accumulation).
    x_bf = x.astype(jnp.bfloat16)
    out_bf = jax.block_until_ready(
        patch_merging_forward(x_bf, gamma, beta, weight, input_resolution=(H, W)))
    ref_bf = _reference_forward(x_bf, gamma, beta, weight, (H, W))
    assert jnp.allclose(out_bf.astype(jnp.float32), ref_bf, atol=5e-2, rtol=5e-2), \
        float(jnp.max(jnp.abs(out_bf.astype(jnp.float32) - ref_bf)))

    print("KERNEL_OK")
</pallas_src>

<mosaic_0001>
module attributes {stable_mosaic.version = 11 : i64} {
  func.func @_patch_merging_kernel(%arg0: i32, %arg1: i32, %arg2: memref<1x2x2x8x8xf32, #tpu.memory_space<vmem>>, %arg3: memref<8x8xf32, #tpu.memory_space<vmem>>, %arg4: memref<8x8xf32, #tpu.memory_space<vmem>>, %arg5: memref<1x8xf32, #tpu.memory_space<vmem>>, %arg6: memref<1x2x8x8xf32, #tpu.memory_space<vmem>>) attributes {dimension_semantics = [#tpu.dimension_semantics<parallel>, #tpu.dimension_semantics<parallel>], iteration_bounds = array<i64: 2, 4>, scalar_prefetch = 0 : i64, scratch_operands = 0 : i64, tpu.core_type = #tpu.core_type<tc>, window_params = [{transform_indices = @transform_0, window_bounds = array<i64: 1, 2, 2, 8, 8>}, {pipeline_mode = #tpu.pipeline_mode<synchronous>, transform_indices = @transform_1, window_bounds = array<i64: 8, 8>}, {pipeline_mode = #tpu.pipeline_mode<synchronous>, transform_indices = @transform_2, window_bounds = array<i64: 8, 8>}, {pipeline_mode = #tpu.pipeline_mode<synchronous>, transform_indices = @transform_3, window_bounds = array<i64: 1, 8>}, {transform_indices = @transform_4, window_bounds = array<i64: 1, 2, 8, 8>}]} {
    %c0 = arith.constant 0 : index
    %c0_0 = arith.constant 0 : index
    %0 = vector.load %arg3[%c0, %c0_0] : memref<8x8xf32, #tpu.memory_space<vmem>>, vector<8x8xf32>
    %c0_1 = arith.constant 0 : index
    %c0_2 = arith.constant 0 : index
    %1 = vector.load %arg4[%c0_1, %c0_2] : memref<8x8xf32, #tpu.memory_space<vmem>>, vector<8x8xf32>
    %c0_3 = arith.constant 0 : index
    %c0_4 = arith.constant 0 : index
    %2 = vector.load %arg5[%c0_3, %c0_4] : memref<1x8xf32, #tpu.memory_space<vmem>>, vector<1x8xf32>
    %c0_5 = arith.constant 0 : index
    %c0_6 = arith.constant 0 : index
    %c0_7 = arith.constant 0 : index
    %c0_8 = arith.constant 0 : index
    %c0_9 = arith.constant 0 : index
    %3 = vector.load %arg2[%c0_5, %c0_6, %c0_7, %c0_8, %c0_9] : memref<1x2x2x8x8xf32, #tpu.memory_space<vmem>>, vector<1x2x1x8x8xf32>
    %4 = vector.shape_cast %3 : vector<1x2x1x8x8xf32> to vector<2x8x8xf32>
    %5 = vector.shape_cast %4 : vector<2x8x8xf32> to vector<16x8xf32>
    %c0_10 = arith.constant 0 : index
    %c0_11 = arith.constant 0 : index
    %c1 = arith.constant 1 : index
    %c0_12 = arith.constant 0 : index
    %c0_13 = arith.constant 0 : index
    %6 = vector.load %arg2[%c0_10, %c0_11, %c1, %c0_12, %c0_13] : memref<1x2x2x8x8xf32, #tpu.memory_space<vmem>>, vector<1x2x1x8x8xf32>
    %7 = vector.shape_cast %6 : vector<1x2x1x8x8xf32> to vector<2x8x8xf32>
    %8 = vector.shape_cast %7 : vector<2x8x8xf32> to vector<16x8xf32>
    %cst = arith.constant dense<0.000000e+00> : vector<16xf32>
    %9 = vector.multi_reduction <add>, %5, %cst [1] : vector<16x8xf32> to vector<16xf32>
    %10 = vector.shape_cast %9 : vector<16xf32> to vector<16x1xf32>
    %cst_14 = arith.constant dense<0.000000e+00> : vector<16xf32>
    %11 = vector.multi_reduction <add>, %8, %cst_14 [1] : vector<16x8xf32> to vector<16xf32>
    %12 = vector.shape_cast %11 : vector<16xf32> to vector<16x1xf32>
    %13 = arith.addf %10, %12 : vector<16x1xf32>
    %cst_15 = arith.constant 6.250000e-02 : f32
    %14 = vector.broadcast %cst_15 : f32 to vector<16x1xf32>
    %15 = arith.mulf %13, %14 : vector<16x1xf32>
    %16 = vector.broadcast %15 : vector<16x1xf32> to vector<16x8xf32>
    %17 = arith.subf %5, %16 : vector<16x8xf32>
    %18 = vector.broadcast %15 : vector<16x1xf32> to vector<16x8xf32>
    %19 = arith.subf %8, %18 : vector<16x8xf32>
    %20 = arith.mulf %17, %17 : vector<16x8xf32>
    %cst_16 = arith.constant dense<0.000000e+00> : vector<16xf32>
    %21 = vector.multi_reduction <add>, %20, %cst_16 [1] : vector<16x8xf32> to vector<16xf32>
    %22 = vector.shape_cast %21 : vector<16xf32> to vector<16x1xf32>
    %23 = arith.mulf %19, %19 : vector<16x8xf32>
    %cst_17 = arith.constant dense<0.000000e+00> : vector<16xf32>
    %24 = vector.multi_reduction <add>, %23, %cst_17 [1] : vector<16x8xf32> to vector<16xf32>
    %25 = vector.shape_cast %24 : vector<16xf32> to vector<16x1xf32>
    %26 = arith.addf %22, %25 : vector<16x1xf32>
    %cst_18 = arith.constant 6.250000e-02 : f32
    %27 = vector.broadcast %cst_18 : f32 to vector<16x1xf32>
    %28 = arith.mulf %26, %27 : vector<16x1xf32>
    %cst_19 = arith.constant 9.99999974E-6 : f32
    %29 = vector.broadcast %cst_19 : f32 to vector<16x1xf32>
    %30 = arith.addf %28, %29 : vector<16x1xf32>
    %31 = math.rsqrt %30 : vector<16x1xf32>
    %32 = vector.broadcast %31 : vector<16x1xf32> to vector<16x8xf32>
    %33 = arith.mulf %17, %32 : vector<16x8xf32>
    %cst_20 = arith.constant dense<0.000000e+00> : vector<16x8xf32>
    %34 = tpu.matmul %33, %0, %cst_20 {dimension_numbers = #tpu.dot_dimension_numbers<[1], [0], [0], [1], [0, 0, 1, 1], [], []>} : vector<16x8xf32>, vector<8x8xf32>, vector<16x8xf32> -> vector<16x8xf32>
    %35 = vector.broadcast %31 : vector<16x1xf32> to vector<16x8xf32>
    %36 = arith.mulf %19, %35 : vector<16x8xf32>
    %cst_21 = arith.constant dense<0.000000e+00> : vector<16x8xf32>
    %37 = tpu.matmul %36, %1, %cst_21 {dimension_numbers = #tpu.dot_dimension_numbers<[1], [0], [0], [1], [0, 0, 1, 1], [], []>} : vector<16x8xf32>, vector<8x8xf32>, vector<16x8xf32> -> vector<16x8xf32>
    %38 = arith.addf %34, %37 : vector<16x8xf32>
    %39 = vector.broadcast %2 : vector<1x8xf32> to vector<16x8xf32>
    %40 = arith.addf %38, %39 : vector<16x8xf32>
    %41 = vector.shape_cast %40 : vector<16x8xf32> to vector<2x8x8xf32>
    %c0_22 = arith.constant 0 : index
    %c0_23 = arith.constant 0 : index
    %c0_24 = arith.constant 0 : index
    %c0_25 = arith.constant 0 : index
    %42 = vector.load %arg6[%c0_22, %c0_23, %c0_24, %c0_25] : memref<1x2x8x8xf32, #tpu.memory_space<vmem>>, vector<1x2x8x8xf32>
    %43 = vector.shape_cast %42 : vector<1x2x8x8xf32> to vector<2x8x8xf32>
    %44 = vector.shape_cast %41 : vector<2x8x8xf32> to vector<1x2x8x8xf32>
    tpu.vector_store %arg6[%c0_22, %c0_23, %c0_24, %c0_25], %44 {strides = array<i32>} : memref<1x2x8x8xf32, #tpu.memory_space<vmem>>, vector<1x2x8x8xf32>,
    return
  }
  func.func @transform_0(%arg0: i32, %arg1: i32) -> (i32, i32, i32, i32, i32) {
    %c0_i32 = arith.constant 0 : i32
    %c0_i32_0 = arith.constant 0 : i32
    %c0_i32_1 = arith.constant 0 : i32
    %c0_i32_2 = arith.constant 0 : i32
    return %arg0, %arg1, %c0_i32, %c0_i32_0, %c0_i32_1 : i32, i32, i32, i32, i32
  }
  func.func @transform_1(%arg0: i32, %arg1: i32) -> (i32, i32) {
    %c0_i32 = arith.constant 0 : i32
    %c0_i32_0 = arith.constant 0 : i32
    %c0_i32_1 = arith.constant 0 : i32
    return %c0_i32, %c0_i32_0 : i32, i32
  }
  func.func @transform_2(%arg0: i32, %arg1: i32) -> (i32, i32) {
    %c0_i32 = arith.constant 0 : i32
    %c0_i32_0 = arith.constant 0 : i32
    %c0_i32_1 = arith.constant 0 : i32
    return %c0_i32, %c0_i32_0 : i32, i32
  }
  func.func @transform_3(%arg0: i32, %arg1: i32) -> (i32, i32) {
    %c0_i32 = arith.constant 0 : i32
    %c0_i32_0 = arith.constant 0 : i32
    %c0_i32_1 = arith.constant 0 : i32
    return %c0_i32, %c0_i32_0 : i32, i32
  }
  func.func @transform_4(%arg0: i32, %arg1: i32) -> (i32, i32, i32, i32) {
    %c0_i32 = arith.constant 0 : i32
    %c0_i32_0 = arith.constant 0 : i32
    %c0_i32_1 = arith.constant 0 : i32
    return %arg0, %arg1, %c0_i32, %c0_i32_0 : i32, i32, i32, i32
  }
}

</mosaic_0001>

<bundles_post_ra>
// kernel: patch_merging_forward.1
= control target key start
LH: loop header
LB: loop body
LE: loop exit
PB: predicated region body
PF: predicated region fallthrough
CT: control target
= control target key end

     0   :  { %s708_s15 = smov 0   ;;  %s710_s16 = smov 0   ;;  %s790_s0 = inlined_call_operand.vmem [shape: f32[2,8,2,8,8], index: 0, kind: input, shape index: {}]   ;;  %s791_s1 = inlined_call_operand.vmem [shape: f32[8,8], index: 1, kind: input, shape index: {}]   ;;  %s792_s2 = inlined_call_operand.vmem [shape: f32[8,8], index: 2, kind: input, shape index: {}]   ;;  %s793_s3 = inlined_call_operand.vmem [shape: f32[1,8], index: 3, kind: input, shape index: {}]   ;;  %s794_s4 = inlined_call_operand.vmem [shape: f32[2,8,8,8], index: 4, kind: output, shape index: {}]  }
   0x1   :  { %s712_s17 = smov 0   ;;  %s714_s18 = smov 0  }
   0x2   :  { %s716_s19 = smov 0  }
   0x3 LB: > { %s23_s20 = sadd.s32 1, %s673_s17  ;;  %s26_s21 = sadd.s32 1, %s677_s18  ;;  %s681_s19 = sphi %s716_s19, %s14_s19   ;;  %s677_s18 = sphi %s714_s18, %s798_s18   ;;  %s673_s17 = sphi %s712_s17, %s797_s17   ;;  %s669_s16 = sphi %s710_s16, %s796_s16   ;;  %s665_s15 = sphi %s708_s15, %s795_s15  }
   0x4   : > { %p24_p0 = scmp.ge.s32.totalorder %s23_s20, 4  ;;  %p566_p1 = scmp.ge.s32.totalorder %s681_s19, 1 }
   0x5   : > { %p184_p2 = scmp.lt.s32.totalorder %s681_s19, 9 }
   0x6   : > { %s800_s20 = smov (%p24_p0, %s23_s20), 0  ;;  %s802_s21 = smov (!%p24_p0, %s26_s21), %s677_s18 }
   0x7   : > { %p185_p3 = pnand %p566_p1, %p184_p2  ;;  %p28_p4 = scmp.ge.s32.totalorder %s802_s21, 2 }
   0x8   : > { %s567_s22 = sshll.u32 (!%p185_p3), %s665_s15, 1  ;;  %p220_p5 = scmp.lt.s32.totalorder (!%p185_p3), %s669_s16, 1 }
   0x9   : > { %s804_s21 = smov (%p28_p4, %s802_s21), 0  ;;  %188 = sbr.rel (%p185_p3) target bundleno = 536 (0x218), region = 36 }
   0xa   : > { %p222_p6 = scmp.lt.s32.totalorder (!%p185_p3), %s567_s22, 7 }
   0xe   : > { %s806_s16 = smov (!%p220_p5, %s669_s16), 1  ;;  %s808_s22 = smov (!%p222_p6, %s567_s22), 7  ;;  %vm248_vm0 = vcmask 64512   ;;  %v241_v28 = vld [vmem:[%s792_s2] sm:$0xff] }
   0xf   : > { %s569_s23 = sshll.u32 %s806_s16, 4  ;;  %s568_s24 = sshll.u32 %s808_s22, 1  ;;  %v240_v29 = vld [vmem:[%s791_s1] sm:$0xff]  ;;  %589 = vmatprep.subr.mxu0 %v241_v28 }
  0x10   : > { %s226_s25 = sadd.s32 %s569_s23, %s568_s24  ;;  %594 = vmatprep.subr.mxu1 %v240_v29  ;;  %590 = vmatpush3.msra.mxu0 %v241_v28  ;;  %s572_s8 = sshll.u32 %s806_s16, 3  ;;  %v580_v47 = vld [vmem:[%s793_s3] ss:$0 sm:$0xff] }
  0x11   : > { %s570_s26 = sshll.u32 %s226_s25, 3  ;;  %595 = vmatpush3.msra.mxu1 %v240_v29  ;;  %s236_s9 = sadd.s32 %s572_s8, %s808_s22 }
  0x12   : > { %s228_s29 = scalar_lea.vmem %s790_s0, %s570_s26  ;;  %s573_s10 = sshll.u32 %s236_s9, 3 }
  0x13   : > { %v244_v0 = vld [vmem:[%s228_s29 + $0x10] sm:$0xff]  ;;  %v243_v1 = vld [vmem:[%s228_s29] sm:$0xff]  ;;  %v575_v2 = vld [vmem:[%s228_s29 + $0x18] sm:$0xff]  ;;  %s238_s15 = scalar_lea.vmem %s794_s4, %s573_s10 }
  0x14   : > { %v252_v3 = vsel %vm248_vm0, %v244_v0, 0.0  ;;  %v249_v4 = vsel %vm248_vm0, %v243_v1, 0.0  ;;  %v574_v5 = vld [vmem:[%s228_s29 + $0x8] sm:$0xff]  ;;  %v258_v6 = vsel %vm248_vm0, %v575_v2, 0.0 }
  0x15   : > { %253 = vadd.xlane.f32.xlu1 %v252_v3  ;;  %250 = vadd.xlane.f32.xlu0 %v249_v4  ;;  %v255_v7 = vsel %vm248_vm0, %v574_v5, 0.0 }
  0x19   : > { %259 = vadd.xlane.f32.xlu1 %v258_v6  ;;  %256 = vadd.xlane.f32.xlu0 %v255_v7 }
  0x9e   : > { %v254_v8 = vpop.xlane.xlu1 %253  ;;  %v251_v9 = vpop.xlane.xlu0 %250 }
  0xa2   : > { %v260_v10 = vpop.xlane.xlu1 %259  ;;  %v257_v11 = vpop.xlane.xlu0 %256 }
  0xa3   : > { %v262_v12 = vadd.f32 %v260_v10, %v254_v8  ;;  %v261_v13 = vadd.f32 %v257_v11, %v251_v9 }
  0xa5   : > { %v264_v14 = vmul.f32 0.0625, %v262_v12  ;;  %v263_v15 = vmul.f32 0.0625, %v261_v13 }
  0xa7   : > { %v266_v16 = vsub.f32 %v244_v0, %v264_v14  ;;  %v268_v17 = vsub.f32 %v575_v2, %v264_v14  ;;  %v265_v18 = vsub.f32 %v243_v1, %v263_v15  ;;  %v267_v19 = vsub.f32 %v574_v5, %v263_v15 }
  0xa9   : > { %v277_v20 = vmul.f32 %v267_v19, %v267_v19  ;;  %v269_v21 = vmul.f32 %v265_v18, %v265_v18  ;;  %v278_v24 = vmul.f32 %v268_v17, %v268_v17  ;;  %v270_v25 = vmul.f32 %v266_v16, %v266_v16 }
  0xab   : > { %v279_v22 = vsel %vm248_vm0, %v277_v20, 0.0  ;;  %v271_v23 = vsel %vm248_vm0, %v269_v21, 0.0  ;;  %v282_v26 = vsel %vm248_vm0, %v278_v24, 0.0  ;;  %v274_v27 = vsel %vm248_vm0, %v270_v25, 0.0 }
  0xac   : > { %280 = vadd.xlane.f32.xlu1 %v279_v22  ;;  %272 = vadd.xlane.f32.xlu0 %v271_v23 }
  0xb0   : > { %283 = vadd.xlane.f32.xlu1 %v282_v26  ;;  %275 = vadd.xlane.f32.xlu0 %v274_v27 }
 0x135   : > { %v281_v30 = vpop.xlane.xlu1 %280  ;;  %v273_v31 = vpop.xlane.xlu0 %272 }
 0x136   : > { %v285_v32 = vadd.f32 %v281_v30, %v273_v31 }
 0x138   : > { %v287_v33 = vmul.f32 0.0625, %v285_v32 }
 0x139   : > { %v284_v34 = vpop.xlane.xlu1 %283  ;;  %v276_v35 = vpop.xlane.xlu0 %275 }
 0x13a   : > { %v289_v36 = vadd.f32 1e-05, %v287_v33  ;;  %v286_v37 = vadd.f32 %v284_v34, %v276_v35 }
 0x13c   : > { %639 = vrsqrt.f32 %v289_v36  ;;  %v288_v38 = vmul.f32 0.0625, %v286_v37 }
 0x13e   : > { %v290_v39 = vadd.f32 1e-05, %v288_v38 }
 0x140   : > { %641 = vrsqrt.f32 %v290_v39 }
 0x149   : > { %v640_v40 = vpop.eup %639 }
 0x14a   : > { %v295_v41 = vmul.f32 %v640_v40, %v267_v19  ;;  %v293_v42 = vmul.f32 %v640_v40, %v265_v18 }
 0x14c   : > { %591 = vmatprep.mubr.msk.f32.mxu0 %vm248_vm0, %v295_v41  ;;  %596 = vmatprep.mubr.msk.f32.mxu1 %vm248_vm0, %v293_v42 }
 0x14d   : > { %v642_v43 = vpop.eup %641 }
 0x14e   : > { %v296_v44 = vmul.f32 %v642_v43, %v268_v17  ;;  %v294_v45 = vmul.f32 %v642_v43, %v266_v16 }
 0x150   : > { %592 = vmatmul.mubr.msk.f32.vlgmr.msra.gmra.mxu0 %vm248_vm0, %v296_v44  ;;  %597 = vmatmul.mubr.msk.f32.vlgmr.msra.gmra.mxu1 %vm248_vm0, %v294_v45 }
 0x210   : > { %v593_v46 = vpop.f32.mrf.mxu0  ;;  %v598_v48 = vpop.f32.mrf.mxu1 }
 0x211   : > { %v456_v49 = vadd.f32 %v598_v48, %v593_v46 }
 0x212   : > { %v369_v50 = vpop.f32.mrf.mxu0  ;;  %v450_v51 = vpop.f32.mrf.mxu1 }
 0x213   : > { %v466_v52 = vadd.f32 %v580_v47, %v456_v49  ;;  %v451_v53 = vadd.f32 %v450_v51, %v369_v50 }
 0x215   : > { %468 = vst.msk [vmem:[%s238_s15 + $0x8] sm:$0xff] %vm248_vm0, %v466_v52  ;;  %v465_v54 = vadd.f32 %v580_v47, %v451_v53 }
 0x217   : > { %467 = vst.msk [vmem:[%s238_s15] sm:$0xff] %vm248_vm0, %v465_v54 }
 0x218 PF: > { %s14_s19 = sadd.s32 1, %s681_s19   ;;  %s795_s15 = smov %s673_s17 }
 0x219   : > { %p11_p7 = scmp.ge.s32.totalorder %s14_s19, 10   ;;  %s796_s16 = smov %s677_s18 }
 0x21a   : > { %s797_s17 = smov %s800_s20  ;;  %s798_s18 = smov %s804_s21 }
 0x21b   :  { %13 = sbr.rel (!%p11_p7) target bundleno = 3 (0x3), region = 67 }

</bundles_post_ra>
